<compile_context>
chip_gen: v7x
topology: tpu7x:2x2x1
jax: 0.10.0
libtpu: 0.0.40
codegen_flags: <defaults>
</compile_context>

<pallas_src>
import numpy as np
import jax
import jax.numpy as jnp
from jax.experimental import pallas as pl
from jax.experimental.pallas import tpu as pltpu

COST_CLASS = 1.0
NUM_CLASSES = 8
QPAD = 128  # lane-dense padding of the cost matrix's target-query (j) axis

try:  # C implementation of the Hungarian solver (host side)
    from scipy.optimize import linear_sum_assignment as _scipy_lsa
except Exception:  # pragma: no cover - fallback below
    _scipy_lsa = None


def _round_up(x, m):
    return (x + m - 1) // m * m


# ----------------------------- Pallas kernel ------------------------------- #

def _cost_and_logprobs_kernel(pred_ref, tgt_ref, cost_ref, logp_ref):
    """Whole-block (BB, QS, C) compute:
         cost[b, i, j] = -cost_class * softmax(pred[b, i])[tgt[b, j]]
         logp[b, i, c] = log_softmax(pred[b, i])[c]
       Padded j columns carry tgt == -1 (matches no class) -> cost stays 0.
       Padded i rows (zero logits) are sliced away by the wrapper."""
    logits = pred_ref[...]                                   # (BB, QS, C) f32
    tgt = tgt_ref[...]                                       # (BB, 1, QPAD) i32
    _, _, C = logits.shape

    m = jnp.max(logits, axis=-1, keepdims=True)              # (BB, QS, 1)
    e = jnp.exp(logits - m)                                  # EUP
    s = jnp.sum(e, axis=-1, keepdims=True)                   # (BB, QS, 1)
    logp_ref[...] = logits - (m + jnp.log(s))                # exact log-softmax

    # Exact division (NOT approx reciprocal): keeps the cost matrix bit-close
    # to the softmax reference so near-tie assignments cannot flip.
    neg_probs = (-COST_CLASS) * (e / s)                      # (BB, QS, C)

    # Unrolled VPU class-select over C=8 (no one-hot materialization, no MXU
    # round trip at this tiny K).  Initialize with the c=0 term instead of a
    # zero-fill pass; padded columns (tgt == -1) select nothing -> 0.
    cost = neg_probs[:, :, 0:1] * (tgt == 0).astype(jnp.float32)
    for c in range(1, C):
        cost = cost + neg_probs[:, :, c:c + 1] * (tgt == c).astype(jnp.float32)
    cost_ref[...] = cost                                     # lane-dense store


# ------------------------------ JAX wrappers ------------------------------- #

@jax.jit
def cost_and_logprobs(predictions, targets):
    B, Q, C = predictions.shape
    QS = _round_up(Q, 8)  # sublane-pad the query axis -> full (8,128) store tiles

    pred_pad = jnp.zeros((B, QS, C), predictions.dtype).at[:, :Q, :].set(predictions)
    # Padded match columns carry class id -1 (matches no class) -> cost stays 0.
    tgt_pad = jnp.full((B, 1, QPAD), -1, dtype=jnp.int32)
    tgt_pad = tgt_pad.at[:, 0, :Q].set(targets.astype(jnp.int32))

    # Single fused block on v5e/v6e; two "parallel" blocks feed v7x's two
    # TensorCores (one grid step each).  All buffers total <100 KiB, so the
    # whole problem is VMEM-resident on every generation.
    # NOTE: at DETR scale (Q~300-900, C~92) tile Q, pad the class axis of logp
    # to 128 and consider the one-hot MXU matmul; re-derive block sizes for
    # v7x's 64 MiB physical / 32 MiB default scoped VMEM.
    nblk = 2 if B % 2 == 0 else 1
    bb = B // nblk

    cost, logp = pl.pallas_call(
        _cost_and_logprobs_kernel,
        grid=(nblk,),
        out_shape=(jax.ShapeDtypeStruct((B, QS, QPAD), jnp.float32),
                   jax.ShapeDtypeStruct((B, QS, C), jnp.float32)),
        in_specs=[pl.BlockSpec((bb, QS, C), lambda i: (i, 0, 0)),
                  pl.BlockSpec((bb, 1, QPAD), lambda i: (i, 0, 0))],
        out_specs=(pl.BlockSpec((bb, QS, QPAD), lambda i: (i, 0, 0)),
                   pl.BlockSpec((bb, QS, C), lambda i: (i, 0, 0))),
        compiler_params=pltpu.CompilerParams(
            dimension_semantics=("parallel",)),
    )(pred_pad, tgt_pad)

    # Slice the padding away on device so the host transfer of `cost` moves
    # Q*Q floats, not QS*128; log_probs never leaves the device.
    return cost[:, :Q, :Q], logp[:, :Q, :]


@jax.jit
def cross_entropy_from_logprobs(log_probs, target_classes):
    """loss = -mean(log_probs[b, i, target[b, i]])  == F.cross_entropy (mean).

    Plain XLA gather+mean: at (B, Q, C) = (10, 11, 8) a pallas_call here is
    pure launch overhead, and XLA fuses this with the target_classes H2D copy.
    """
    # TODO(synk): a target equal to NUM_CLASSES (unmatched-query fill value)
    # would index out of range vs F.cross_entropy semantics; it never happens
    # here because Q_pred == Q_tgt so every query is matched.
    picked = jnp.take_along_axis(
        log_probs, target_classes[..., None].astype(jnp.int32), axis=-1)
    return -jnp.mean(picked)


# ----------------------- host-side Hungarian solver ------------------------ #
# TODO(synk): linear_sum_assignment is a sequential, data-dependent
# combinatorial solver with no clean Pallas equivalent; it runs on the host
# (scipy's C solver when available, otherwise a NumPy Jonker-Volgenant).

def _linear_sum_assignment_jv(cost):
    """Minimizing Hungarian (Jonker-Volgenant) for an n x m cost matrix, n <= m."""
    cost = np.asarray(cost, dtype=np.float64)
    n, m = cost.shape
    INF = float('inf')
    u = np.zeros(n + 1)
    v = np.zeros(m + 1)
    p = np.zeros(m + 1, dtype=np.int64)
    way = np.zeros(m + 1, dtype=np.int64)
    for i in range(1, n + 1):
        p[0] = i
        j0 = 0
        minv = np.full(m + 1, INF)
        used = np.zeros(m + 1, dtype=bool)
        while True:
            used[j0] = True
            i0 = p[j0]
            delta = INF
            j1 = -1
            for j in range(1, m + 1):
                if not used[j]:
                    cur = cost[i0 - 1, j - 1] - u[i0] - v[j]
                    if cur < minv[j]:
                        minv[j] = cur
                        way[j] = j0
                    if minv[j] < delta:
                        delta = minv[j]
                        j1 = j
            for j in range(m + 1):
                if used[j]:
                    u[p[j]] += delta
                    v[j] -= delta
                else:
                    minv[j] -= delta
            j0 = j1
            if p[j0] == 0:
                break
        while True:
            j1 = way[j0]
            p[j0] = p[j1]
            j0 = j1
            if j0 == 0:
                break
    row_ind = np.arange(n)
    col_ind = np.zeros(n, dtype=np.int64)
    for j in range(1, m + 1):
        if p[j] != 0:
            col_ind[p[j] - 1] = j - 1
    return row_ind, col_ind


def _assign(cost):
    if _scipy_lsa is not None:
        r, c = _scipy_lsa(cost)
        return np.asarray(r), np.asarray(c)
    return _linear_sum_assignment_jv(cost)


def hungarian_loss(predictions, targets):
    """Full forward pass of the PyTorch HungarianLoss module."""
    B, Q, _ = predictions.shape
    cost, log_probs = cost_and_logprobs(predictions, targets)
    # One blocking device->host transfer: the already-sliced (B, Q, Q) cost and
    # the tiny targets ride the same fetch; log_probs stays on device.
    cost_host, tgt_np = jax.device_get((cost, targets))
    cost_host = np.asarray(cost_host)
    tgt_np = np.asarray(tgt_np)
    target_classes = np.full((B, Q), NUM_CLASSES, dtype=np.int32)
    for b in range(B):
        row, col = _assign(cost_host[b])                 # per-batch Q x Q matching
        target_classes[b, row] = tgt_np[b, col]          # permuted target class ids
    return cross_entropy_from_logprobs(
        log_probs, jnp.asarray(target_classes, dtype=jnp.int32))


# ---------------------------------- main ----------------------------------- #

if __name__ == "__main__":
    B, Q, C = 10, 11, NUM_CLASSES   # matches the module's example tensors
    key = jax.random.PRNGKey(0)
    kp, kt = jax.random.split(key)
    predictions = jax.random.normal(kp, (B, Q, C), dtype=jnp.float32)
    targets = jax.random.randint(kt, (B, Q), 0, NUM_CLASSES, dtype=jnp.int32)

    loss = jax.block_until_ready(hungarian_loss(predictions, targets))

    # --- sanity checks against plain-JAX references (exact math -> tight tol) ---
    cost_krn, logp_krn = jax.block_until_ready(cost_and_logprobs(predictions, targets))

    probs_ref = jax.nn.softmax(predictions, axis=-1)
    idx = jnp.broadcast_to(targets[:, None, :, None], (B, Q, Q, 1)).astype(jnp.int32)
    cost_ref = -COST_CLASS * jnp.take_along_axis(
        jnp.broadcast_to(probs_ref[:, :, None, :], (B, Q, Q, C)), idx, axis=-1)[..., 0]
    assert np.allclose(np.asarray(cost_krn), np.asarray(cost_ref), atol=1e-5)

    logp_ref = jax.nn.log_softmax(predictions, axis=-1)
    assert np.allclose(np.asarray(logp_krn), np.asarray(logp_ref), atol=1e-5)

    # End-to-end check: redo the same host matching on the kernel cost and
    # evaluate cross-entropy with the exact-softmax reference log-probs.
    cost_np = np.asarray(cost_krn)
    tgt_np = np.asarray(jax.device_get(targets))
    target_classes_ref = np.full((B, Q), NUM_CLASSES, dtype=np.int64)
    for b in range(B):
        row, col = _assign(cost_np[b])
        target_classes_ref[b, row] = tgt_np[b, col]
    loss_ref = -np.mean(np.take_along_axis(
        np.asarray(logp_ref), target_classes_ref[..., None], axis=-1))

    assert np.isfinite(float(loss))
    assert np.allclose(float(loss), float(loss_ref), atol=1e-5)
    print("KERNEL_OK")
</pallas_src>

<mosaic_0001>
module attributes {stable_mosaic.version = 11 : i64} {
  func.func @_cost_and_logprobs_kernel(%arg0: i32, %arg1: memref<5x16x8xf32, #tpu.memory_space<vmem>>, %arg2: memref<5x1x128xi32, #tpu.memory_space<vmem>>, %arg3: memref<5x16x128xf32, #tpu.memory_space<vmem>>, %arg4: memref<5x16x8xf32, #tpu.memory_space<vmem>>) attributes {dimension_semantics = [#tpu.dimension_semantics<parallel>], iteration_bounds = array<i64: 2>, scalar_prefetch = 0 : i64, scratch_operands = 0 : i64, tpu.core_type = #tpu.core_type<tc>, window_params = [{transform_indices = @transform_0, window_bounds = array<i64: 5, 16, 8>}, {transform_indices = @transform_1, window_bounds = array<i64: 5, 1, 128>}, {transform_indices = @transform_2, window_bounds = array<i64: 5, 16, 128>}, {transform_indices = @transform_3, window_bounds = array<i64: 5, 16, 8>}]} {
    %c0 = arith.constant 0 : index
    %c0_0 = arith.constant 0 : index
    %c0_1 = arith.constant 0 : index
    %0 = vector.load %arg1[%c0, %c0_0, %c0_1] : memref<5x16x8xf32, #tpu.memory_space<vmem>>, vector<5x16x8xf32>
    %c0_2 = arith.constant 0 : index
    %c0_3 = arith.constant 0 : index
    %c0_4 = arith.constant 0 : index
    %1 = vector.load %arg2[%c0_2, %c0_3, %c0_4] : memref<5x1x128xi32, #tpu.memory_space<vmem>>, vector<5x1x128xi32>
    %cst = arith.constant dense<0xFF800000> : vector<5x16xf32>
    %2 = vector.multi_reduction <maximumf>, %0, %cst [2] : vector<5x16x8xf32> to vector<5x16xf32>
    %3 = vector.shape_cast %2 : vector<5x16xf32> to vector<5x16x1xf32>
    %4 = vector.broadcast %3 : vector<5x16x1xf32> to vector<5x16x8xf32>
    %5 = arith.subf %0, %4 : vector<5x16x8xf32>
    %6 = math.exp %5 : vector<5x16x8xf32>
    %cst_5 = arith.constant dense<0.000000e+00> : vector<5x16xf32>
    %7 = vector.multi_reduction <add>, %6, %cst_5 [2] : vector<5x16x8xf32> to vector<5x16xf32>
    %8 = vector.shape_cast %7 : vector<5x16xf32> to vector<5x16x1xf32>
    %9 = math.log %8 : vector<5x16x1xf32>
    %10 = arith.addf %3, %9 : vector<5x16x1xf32>
    %11 = vector.broadcast %10 : vector<5x16x1xf32> to vector<5x16x8xf32>
    %12 = arith.subf %0, %11 : vector<5x16x8xf32>
    %c0_6 = arith.constant 0 : index
    %c0_7 = arith.constant 0 : index
    %c0_8 = arith.constant 0 : index
    %13 = vector.load %arg4[%c0_6, %c0_7, %c0_8] : memref<5x16x8xf32, #tpu.memory_space<vmem>>, vector<5x16x8xf32>
    tpu.vector_store %arg4[%c0_6, %c0_7, %c0_8], %12 {strides = array<i32>} : memref<5x16x8xf32, #tpu.memory_space<vmem>>, vector<5x16x8xf32>,
    %14 = vector.broadcast %8 : vector<5x16x1xf32> to vector<5x16x8xf32>
    %15 = arith.divf %6, %14 : vector<5x16x8xf32>
    %cst_9 = arith.constant -1.000000e+00 : f32
    %16 = vector.broadcast %cst_9 : f32 to vector<5x16x8xf32>
    %17 = arith.mulf %16, %15 : vector<5x16x8xf32>
    %18 = vector.extract_strided_slice %17 {offsets = [0, 0, 0], sizes = [5, 16, 1], strides = [1, 1, 1]} : vector<5x16x8xf32> to vector<5x16x1xf32>
    %c0_i32 = arith.constant 0 : i32
    %19 = vector.broadcast %c0_i32 : i32 to vector<5x1x128xi32>
    %20 = arith.cmpi eq, %1, %19 : vector<5x1x128xi32>
    %21 = arith.extui %20 : vector<5x1x128xi1> to vector<5x1x128xi32>
    %22 = arith.sitofp %21 : vector<5x1x128xi32> to vector<5x1x128xf32>
    %23 = vector.broadcast %18 : vector<5x16x1xf32> to vector<5x16x128xf32>
    %24 = vector.broadcast %22 : vector<5x1x128xf32> to vector<5x16x128xf32>
    %25 = arith.mulf %23, %24 : vector<5x16x128xf32>
    %26 = vector.extract_strided_slice %17 {offsets = [0, 0, 1], sizes = [5, 16, 1], strides = [1, 1, 1]} : vector<5x16x8xf32> to vector<5x16x1xf32>
    %c1_i32 = arith.constant 1 : i32
    %27 = vector.broadcast %c1_i32 : i32 to vector<5x1x128xi32>
    %28 = arith.cmpi eq, %1, %27 : vector<5x1x128xi32>
    %29 = arith.extui %28 : vector<5x1x128xi1> to vector<5x1x128xi32>
    %30 = arith.sitofp %29 : vector<5x1x128xi32> to vector<5x1x128xf32>
    %31 = vector.broadcast %26 : vector<5x16x1xf32> to vector<5x16x128xf32>
    %32 = vector.broadcast %30 : vector<5x1x128xf32> to vector<5x16x128xf32>
    %33 = arith.mulf %31, %32 : vector<5x16x128xf32>
    %34 = arith.addf %25, %33 : vector<5x16x128xf32>
    %35 = vector.extract_strided_slice %17 {offsets = [0, 0, 2], sizes = [5, 16, 1], strides = [1, 1, 1]} : vector<5x16x8xf32> to vector<5x16x1xf32>
    %c2_i32 = arith.constant 2 : i32
    %36 = vector.broadcast %c2_i32 : i32 to vector<5x1x128xi32>
    %37 = arith.cmpi eq, %1, %36 : vector<5x1x128xi32>
    %38 = arith.extui %37 : vector<5x1x128xi1> to vector<5x1x128xi32>
    %39 = arith.sitofp %38 : vector<5x1x128xi32> to vector<5x1x128xf32>
    %40 = vector.broadcast %35 : vector<5x16x1xf32> to vector<5x16x128xf32>
    %41 = vector.broadcast %39 : vector<5x1x128xf32> to vector<5x16x128xf32>
    %42 = arith.mulf %40, %41 : vector<5x16x128xf32>
    %43 = arith.addf %34, %42 : vector<5x16x128xf32>
    %44 = vector.extract_strided_slice %17 {offsets = [0, 0, 3], sizes = [5, 16, 1], strides = [1, 1, 1]} : vector<5x16x8xf32> to vector<5x16x1xf32>
    %c3_i32 = arith.constant 3 : i32
    %45 = vector.broadcast %c3_i32 : i32 to vector<5x1x128xi32>
    %46 = arith.cmpi eq, %1, %45 : vector<5x1x128xi32>
    %47 = arith.extui %46 : vector<5x1x128xi1> to vector<5x1x128xi32>
    %48 = arith.sitofp %47 : vector<5x1x128xi32> to vector<5x1x128xf32>
    %49 = vector.broadcast %44 : vector<5x16x1xf32> to vector<5x16x128xf32>
    %50 = vector.broadcast %48 : vector<5x1x128xf32> to vector<5x16x128xf32>
    %51 = arith.mulf %49, %50 : vector<5x16x128xf32>
    %52 = arith.addf %43, %51 : vector<5x16x128xf32>
    %53 = vector.extract_strided_slice %17 {offsets = [0, 0, 4], sizes = [5, 16, 1], strides = [1, 1, 1]} : vector<5x16x8xf32> to vector<5x16x1xf32>
    %c4_i32 = arith.constant 4 : i32
    %54 = vector.broadcast %c4_i32 : i32 to vector<5x1x128xi32>
    %55 = arith.cmpi eq, %1, %54 : vector<5x1x128xi32>
    %56 = arith.extui %55 : vector<5x1x128xi1> to vector<5x1x128xi32>
    %57 = arith.sitofp %56 : vector<5x1x128xi32> to vector<5x1x128xf32>
    %58 = vector.broadcast %53 : vector<5x16x1xf32> to vector<5x16x128xf32>
    %59 = vector.broadcast %57 : vector<5x1x128xf32> to vector<5x16x128xf32>
    %60 = arith.mulf %58, %59 : vector<5x16x128xf32>
    %61 = arith.addf %52, %60 : vector<5x16x128xf32>
    %62 = vector.extract_strided_slice %17 {offsets = [0, 0, 5], sizes = [5, 16, 1], strides = [1, 1, 1]} : vector<5x16x8xf32> to vector<5x16x1xf32>
    %c5_i32 = arith.constant 5 : i32
    %63 = vector.broadcast %c5_i32 : i32 to vector<5x1x128xi32>
    %64 = arith.cmpi eq, %1, %63 : vector<5x1x128xi32>
    %65 = arith.extui %64 : vector<5x1x128xi1> to vector<5x1x128xi32>
    %66 = arith.sitofp %65 : vector<5x1x128xi32> to vector<5x1x128xf32>
    %67 = vector.broadcast %62 : vector<5x16x1xf32> to vector<5x16x128xf32>
    %68 = vector.broadcast %66 : vector<5x1x128xf32> to vector<5x16x128xf32>
    %69 = arith.mulf %67, %68 : vector<5x16x128xf32>
    %70 = arith.addf %61, %69 : vector<5x16x128xf32>
    %71 = vector.extract_strided_slice %17 {offsets = [0, 0, 6], sizes = [5, 16, 1], strides = [1, 1, 1]} : vector<5x16x8xf32> to vector<5x16x1xf32>
    %c6_i32 = arith.constant 6 : i32
    %72 = vector.broadcast %c6_i32 : i32 to vector<5x1x128xi32>
    %73 = arith.cmpi eq, %1, %72 : vector<5x1x128xi32>
    %74 = arith.extui %73 : vector<5x1x128xi1> to vector<5x1x128xi32>
    %75 = arith.sitofp %74 : vector<5x1x128xi32> to vector<5x1x128xf32>
    %76 = vector.broadcast %71 : vector<5x16x1xf32> to vector<5x16x128xf32>
    %77 = vector.broadcast %75 : vector<5x1x128xf32> to vector<5x16x128xf32>
    %78 = arith.mulf %76, %77 : vector<5x16x128xf32>
    %79 = arith.addf %70, %78 : vector<5x16x128xf32>
    %80 = vector.extract_strided_slice %17 {offsets = [0, 0, 7], sizes = [5, 16, 1], strides = [1, 1, 1]} : vector<5x16x8xf32> to vector<5x16x1xf32>
    %c7_i32 = arith.constant 7 : i32
    %81 = vector.broadcast %c7_i32 : i32 to vector<5x1x128xi32>
    %82 = arith.cmpi eq, %1, %81 : vector<5x1x128xi32>
    %83 = arith.extui %82 : vector<5x1x128xi1> to vector<5x1x128xi32>
    %84 = arith.sitofp %83 : vector<5x1x128xi32> to vector<5x1x128xf32>
    %85 = vector.broadcast %80 : vector<5x16x1xf32> to vector<5x16x128xf32>
    %86 = vector.broadcast %84 : vector<5x1x128xf32> to vector<5x16x128xf32>
    %87 = arith.mulf %85, %86 : vector<5x16x128xf32>
    %88 = arith.addf %79, %87 : vector<5x16x128xf32>
    %c0_10 = arith.constant 0 : index
    %c0_11 = arith.constant 0 : index
    %c0_12 = arith.constant 0 : index
    %89 = vector.load %arg3[%c0_10, %c0_11, %c0_12] : memref<5x16x128xf32, #tpu.memory_space<vmem>>, vector<5x16x128xf32>
    tpu.vector_store %arg3[%c0_10, %c0_11, %c0_12], %88 {strides = array<i32>} : memref<5x16x128xf32, #tpu.memory_space<vmem>>, vector<5x16x128xf32>,
    return
  }
  func.func @transform_0(%arg0: i32) -> (i32, i32, i32) {
    %c0_i32 = arith.constant 0 : i32
    %c0_i32_0 = arith.constant 0 : i32
    %c0_i32_1 = arith.constant 0 : i32
    return %arg0, %c0_i32, %c0_i32_0 : i32, i32, i32
  }
  func.func @transform_1(%arg0: i32) -> (i32, i32, i32) {
    %c0_i32 = arith.constant 0 : i32
    %c0_i32_0 = arith.constant 0 : i32
    %c0_i32_1 = arith.constant 0 : i32
    return %arg0, %c0_i32, %c0_i32_0 : i32, i32, i32
  }
  func.func @transform_2(%arg0: i32) -> (i32, i32, i32) {
    %c0_i32 = arith.constant 0 : i32
    %c0_i32_0 = arith.constant 0 : i32
    %c0_i32_1 = arith.constant 0 : i32
    return %arg0, %c0_i32, %c0_i32_0 : i32, i32, i32
  }
  func.func @transform_3(%arg0: i32) -> (i32, i32, i32) {
    %c0_i32 = arith.constant 0 : i32
    %c0_i32_0 = arith.constant 0 : i32
    %c0_i32_1 = arith.constant 0 : i32
    return %arg0, %c0_i32, %c0_i32_0 : i32, i32, i32
  }
}

</mosaic_0001>

<bundles_post_ra>
// kernel: cost_and_logprobs.1
= control target key start
LH: loop header
LB: loop body
LE: loop exit
PB: predicated region body
PF: predicated region fallthrough
CT: control target
= control target key end

     0   :  { %9 = vsyncpa [#allocation3], 0  ;;  %s2410_s0 = inlined_call_operand.vmem [shape: f32[10,16,8], index: 0, kind: input, shape index: {}]   ;;  %s2411_s1 = inlined_call_operand.vmem [shape: s32[10,1,128], index: 1, kind: input, shape index: {}]   ;;  %s2412_s2 = inlined_call_operand.hbm [shape: f32[10,16,128], index: 2, kind: output, shape index: {0}]   ;;  %s2413_s3 = inlined_call_operand.vmem [shape: f32[10,16,8], index: 3, kind: output, shape index: {1}]  }
   0x1   :  { %11 = vsyncpa [#allocation3 + $0x1], 0  ;;  %s1648_s12 = smov 0   ;;  %s1650_s13 = smov 0  }
   0x2   :  { %s1652_s14 = smov 0   ;;  %s1654_s15 = smov 0  }
   0x3 LB: > { %s1669_s16 = sadd.s32 4294967295, %s1614_s15   ;;  %s1368_s17 = sadd.s32 4294967294, %s1614_s15   ;;  %s1614_s15 = sphi %s1654_s15, %s2419_s15   ;;  %s1610_s14 = sphi %s1652_s14, %s2418_s14   ;;  %s1606_s13 = sphi %s1650_s13, %s2417_s13   ;;  %s1602_s12 = sphi %s1648_s12, %s2416_s12  }
   0x4   : > { %s1673_s18 = sadd.s32 1, %s1614_s15   ;;  %s76_s19 = sadd.s32 1, %s1610_s14 }
   0x5   : > { %s73_s20 = ssub.s32 %s1614_s15, %s1673_s18  ;;  %p86_p0 = scmp.ne.s32.totalorder %s1610_s14, %s1606_s13 }
   0x6   : > { %p74_p1 = scmp.eq.s32.totalorder %s73_s20, 0  ;;  %p87_p2 = scmp.eq.s32.totalorder %s1669_s16, 1 }
   0x7   : > { %p92_p3 = scmp.ne.s32.totalorder %s1606_s13, %s1602_s12  ;;  %p93_p4 = scmp.eq.s32.totalorder %s1368_s17, 1 }
   0x8   : > { %s1684_s21 = scalar_select %p74_p1, %s1610_s14, %s76_s19  }
   0x9   : > { %p1686_p5 = por %p87_p2, %p86_p0  ;;  %p1690_p6 = por %p93_p4, %p92_p3 }
   0xa   : > { %p1371_p7 = scmp.ge.s32.totalorder %s1614_s15, 1  ;;  %p155_p8 = scmp.lt.s32.totalorder %s1614_s15, 3 }
   0xc   : > { %p156_p9 = pnand %p1371_p7, %p155_p8 }
   0xd   : > { %s190_s24 = smul.u32 (!%p156_p9), 5, %s1669_s16  ;;  %vm225_vm0 = vcmask (!%p156_p9), 64512   ;;  %s179_s8 = sand.u32 (!%p156_p9), 1, %s1606_s13  }
   0xe   : > { %159 = sbr.rel (%p156_p9) target bundleno = 684 (0x2ac), region = 28  ;;  %s1625_s26 = smov (!%p156_p9), [#allocation2]  }
   0xf   : > { %p191_p10 = scmp.lt.s32.totalorder (!%p156_p9), %s190_s24, 9  ;;  %s1425_s9 = smul.u32 (!%p156_p9), 80, %s179_s8 }
  0x10   : > { %s1424_s11 = smul.u32 (!%p156_p9), 1280, %s1669_s16  ;;  %s2369_s16 = scalar_lea.sflag (!%p156_p9), [#allocation3], %s179_s8 }
  0x11   : > { %s2271_s10 = scalar_lea.vmem (!%p156_p9), [#allocation2], %s1425_s9  ;;  %s1556_s27 = sshll.u32 (!%p156_p9), %s1625_s26, 4  ;;  %s1557_s27 = int_to_ptr.vmem [resolvable:$false] %s1556_s27 }
  0x12   : > { %s1267_s17 = sshll.u32 (!%p156_p9), %s2271_s10, 4  ;;  %s2359_s17 = int_to_ptr.vmem [resolvable:$true] %s1267_s17 }
  0x13   : > { %p1559_p0 = scmp.lt.s32.totalorder (!%p156_p9), %s2359_s17, %s1557_s27 }
  0x15   : > { %s2421_s24 = smov (!%p191_p10, %s190_s24), 9 }
  0x16   : > { %s1420_s25 = sshll.u32 %s2421_s24, 4  ;;  %s1971_s7 = scalar_lea.vmem %s2411_s1, %s2421_s24 }
  0x17   : > { %s195_s28 = scalar_lea.vmem %s2410_s0, %s1420_s25  ;;  %s1832_s4 = scalar_lea.vmem %s2413_s3, %s1420_s25 }
  0x18   : > { %v1705_v0 = vld [vmem:[%s195_s28] sm:$0xff]  ;;  %v1707_v1 = vld [vmem:[%s195_s28 + $0x10] sm:$0xff]  ;;  %v1709_v2 = vld [vmem:[%s195_s28 + $0x8] sm:$0xff]  ;;  %s2364_s24 = scalar_lea.hbm %s2412_s2, %s1424_s11  ;;  %s1552_s25 = scalar_lea.vmem %s2359_s17, 1280 }
  0x19   : > { %v226_v3 = vsel %vm225_vm0, %v1705_v0, -inf  ;;  %v232_v4 = vsel %vm225_vm0, %v1707_v1, -inf  ;;  %v1715_v5 = vld [vmem:[%s195_s28 + $0x18] sm:$0xff]  ;;  %v229_v6 = vsel %vm225_vm0, %v1709_v2, -inf  ;;  %v1721_v8 = vld [vmem:[%s195_s28 + $0x20] sm:$0xff]  ;;  %v1723_v9 = vld [vmem:[%s195_s28 + $0x28] sm:$0xff]  ;;  %p1553_p11 = scmp.ne.s32.totalorder %s2359_s17, %s1552_s25 }
  0x1a   : > { %227 = vmax.xlane.f32.xlu0 %v226_v3  ;;  %233 = vmax.xlane.f32.xlu1 %v232_v4  ;;  %v235_v7 = vsel %vm225_vm0, %v1715_v5, -inf  ;;  %v238_v10 = vsel %vm225_vm0, %v1721_v8, -inf  ;;  %v241_v11 = vsel %vm225_vm0, %v1723_v9, -inf  ;;  %v1729_v12 = vld [vmem:[%s195_s28 + $0x30] sm:$0xff]  ;;  %v1731_v13 = vld [vmem:[%s195_s28 + $0x38] sm:$0xff]  ;;  %v1737_v16 = vld [vmem:[%s195_s28 + $0x40] sm:$0xff] }
  0x1b   : > { %v244_v14 = vsel %vm225_vm0, %v1729_v12, -inf  ;;  %v247_v15 = vsel %vm225_vm0, %v1731_v13, -inf  ;;  %v1739_v17 = vld [vmem:[%s195_s28 + $0x48] sm:$0xff]  ;;  %v250_v18 = vsel %vm225_vm0, %v1737_v16, -inf  ;;  %p1554_p12 = pnand %p1553_p11, %p1686_p5  ;;  %s1558_s28 = scalar_lea.vmem %s1557_s27, 2560 }
  0x1c   : > { %v253_v19 = vsel %vm225_vm0, %v1739_v17, -inf  ;;  %p1560_p1 = scmp.lt.s32.totalorder %s1558_s28, %s1552_s25 }
  0x1d   : > { %p1555_p13 = pneg %p1554_p12 }
  0x1e   : > { %230 = vmax.xlane.f32.xlu0 %v229_v6  ;;  %236 = vmax.xlane.f32.xlu1 %v235_v7  ;;  %p1561_p2 = por %p1560_p1, %p1559_p0 }
  0x20   : > { %p1562_p3 = pnand %p1561_p2, %p1555_p13 }
  0x22   : > { %239 = vmax.xlane.f32.xlu0 %v238_v10  ;;  %242 = vmax.xlane.f32.xlu1 %v241_v11 }
  0x26   : > { %245 = vmax.xlane.f32.xlu0 %v244_v14  ;;  %248 = vmax.xlane.f32.xlu1 %v247_v15  ;;  %v1616_v14 = vmov 0  }
  0x27   : > { %1476 = vset.pattern.permute.xlu0 %v1616_v14  ;;  %1477 = vset.pattern.permute.xlu1 %v1616_v14 }
  0x2a   : > { %251 = vmax.xlane.f32.xlu0 %v250_v18  ;;  %254 = vmax.xlane.f32.xlu1 %v253_v19 }
  0xa7   : > { %v1745_v20 = vpop.xlane.xlu0 %227  ;;  %v1747_v21 = vpop.xlane.xlu1 %233 }
  0xa8   : > { %v256_v22 = vsub.f32 %v1705_v0, %v1745_v20  ;;  %v258_v23 = vsub.f32 %v1707_v1, %v1747_v21 }
  0xaa   : > { %v266_v24 = vmul.f32 1.442695, %v256_v22  ;;  %v270_v25 = vmul.f32 1.442695, %v258_v23 }
  0xab   : > { %v1753_v26 = vpop.xlane.xlu0 %230  ;;  %v1755_v27 = vpop.xlane.xlu1 %236 }
  0xac   : > { %1492 = vpow2.f32 %v266_v24  ;;  %v257_v28 = vsub.f32 %v1709_v2, %v1753_v26  ;;  %v259_v29 = vsub.f32 %v1715_v5, %v1755_v27 }
  0xad   : > { %1494 = vpow2.f32 %v270_v25 }
  0xae   : > { %v268_v30 = vmul.f32 1.442695, %v257_v28  ;;  %v272_v31 = vmul.f32 1.442695, %v259_v29 }
  0xaf   : > { %v1761_v32 = vpop.xlane.xlu0 %239  ;;  %v1763_v33 = vpop.xlane.xlu1 %242 }
  0xb0   : > { %1496 = vpow2.f32 %v268_v30  ;;  %v260_v34 = vsub.f32 %v1721_v8, %v1761_v32  ;;  %v261_v35 = vsub.f32 %v1723_v9, %v1763_v33 }
  0xb1   : > { %1498 = vpow2.f32 %v272_v31 }
  0xb2   : > { %v274_v36 = vmul.f32 1.442695, %v260_v34  ;;  %v276_v37 = vmul.f32 1.442695, %v261_v35 }
  0xb3   : > { %v1769_v38 = vpop.xlane.xlu0 %245  ;;  %v1771_v39 = vpop.xlane.xlu1 %248 }
  0xb4   : > { %1500 = vpow2.f32 %v274_v36  ;;  %v262_v40 = vsub.f32 %v1729_v12, %v1769_v38  ;;  %v263_v41 = vsub.f32 %v1731_v13, %v1771_v39 }
  0xb5   : > { %1502 = vpow2.f32 %v276_v37 }
  0xb6   : > { %v1777_v42 = vpop.eup %1492  ;;  %v278_v43 = vmul.f32 1.442695, %v262_v40  ;;  %v280_v44 = vmul.f32 1.442695, %v263_v41 }
  0xb7   : > { %v1779_v45 = vpop.eup %1494  ;;  %v1781_v46 = vpop.xlane.xlu0 %251  ;;  %v286_v47 = vsel %vm225_vm0, %v1777_v42, 0.0 }
  0xb8   : > { %v1785_v48 = vpop.xlane.xlu1 %254  ;;  %1504 = vpow2.f32 %v278_v43  ;;  %v264_v49 = vsub.f32 %v1737_v16, %v1781_v46  ;;  %287 = vadd.xlane.f32.xlu0 %v286_v47  ;;  %v292_v51 = vsel %vm225_vm0, %v1779_v45, 0.0 }
  0xb9   : > { %v265_v50 = vsub.f32 %v1739_v17, %v1785_v48  ;;  %1506 = vpow2.f32 %v280_v44 }
  0xba   : > { %v1793_v52 = vpop.eup %1496  ;;  %v282_v53 = vmul.f32 1.442695, %v264_v49 }
  0xbb   : > { %v284_v54 = vmul.f32 1.442695, %v265_v50  ;;  %v1795_v55 = vpop.eup %1498  ;;  %v289_v56 = vsel %vm225_vm0, %v1793_v52, 0.0 }
  0xbc   : > { %1508 = vpow2.f32 %v282_v53  ;;  %293 = vadd.xlane.f32.xlu0 %v292_v51  ;;  %290 = vadd.xlane.f32.xlu1 %v289_v56  ;;  %v295_v57 = vsel %vm225_vm0, %v1795_v55, 0.0 }
  0xbd   : > { %1510 = vpow2.f32 %v284_v54 }
  0xbe   : > { %v1801_v58 = vpop.eup %1500 }
  0xbf   : > { %v1803_v59 = vpop.eup %1502  ;;  %v298_v60 = vsel %vm225_vm0, %v1801_v58, 0.0 }
  0xc0   : > { %296 = vadd.xlane.f32.xlu1 %v295_v57  ;;  %299 = vadd.xlane.f32.xlu0 %v298_v60  ;;  %v301_v61 = vsel %vm225_vm0, %v1803_v59, 0.0 }
  0xc2   : > { %v1809_v62 = vpop.eup %1504 }
  0xc3   : > { %v1811_v63 = vpop.eup %1506  ;;  %v304_v3 = vsel %vm225_vm0, %v1809_v62, 0.0 }
  0xc4   : > { %302 = vadd.xlane.f32.xlu1 %v301_v61  ;;  %305 = vadd.xlane.f32.xlu0 %v304_v3  ;;  %v307_v4 = vsel %vm225_vm0, %v1811_v63, 0.0 }
  0xc6   : > { %v1817_v6 = vpop.eup %1508 }
  0xc7   : > { %v1819_v7 = vpop.eup %1510  ;;  %v310_v10 = vsel %vm225_vm0, %v1817_v6, 0.0 }
  0xc8   : > { %308 = vadd.xlane.f32.xlu1 %v307_v4  ;;  %311 = vadd.xlane.f32.xlu0 %v310_v10  ;;  %v313_v11 = vsel %vm225_vm0, %v1819_v7, 0.0 }
  0xcc   : > { %314 = vadd.xlane.f32.xlu1 %v313_v11 }
 0x145   : > { %v288_v15 = vpop.xlane.xlu0 %287 }
 0x146   : > { %1512 = vlog2.f32 %v288_v15 }
 0x147   : > { %1514 = vrcp.f32 %v288_v15 }
 0x149   : > { %v291_v18 = vpop.xlane.xlu1 %290  ;;  %v294_v19 = vpop.xlane.xlu0 %293 }
 0x14a   : > { %1516 = vlog2.f32 %v291_v18 }
 0x14b   : > { %1518 = vrcp.f32 %v291_v18 }
 0x14c   : > { %1520 = vlog2.f32 %v294_v19 }
 0x14d   : > { %1522 = vrcp.f32 %v294_v19  ;;  %v297_v22 = vpop.xlane.xlu1 %296  ;;  %v300_v23 = vpop.xlane.xlu0 %299 }
 0x14e   : > { %1524 = vlog2.f32 %v297_v22 }
 0x14f   : > { %1526 = vrcp.f32 %v297_v22 }
 0x150   : > { %v1513_v24 = vpop.eup %1512  ;;  %1528 = vlog2.f32 %v300_v23 }
 0x151   : > { %v1515_v25 = vpop.eup %1514  ;;  %v317_v28 = vmul.f32 0.6931472, %v1513_v24  ;;  %v303_v29 = vpop.xlane.xlu1 %302 }
 0x152   : > { %v306_v30 = vpop.xlane.xlu0 %305  ;;  %v367_v31 = vmul.f32 %v1515_v25, %v1777_v42  ;;  %1530 = vlog2.f32 %v303_v29 }
 0x153   : > { %v336_v34 = vadd.f32 %v317_v28, %v1745_v20  ;;  %1532 = vrcp.f32 %v300_v23 }
 0x154   : > { %v1517_v35 = vpop.eup %1516  ;;  %v1834_v36 = vmul.f32 -1.0, %v367_v31  ;;  %1534 = vlog2.f32 %v306_v30 }
 0x155   : > { %v1519_v37 = vpop.eup %1518  ;;  %v346_v40 = vsub.f32 %v1705_v0, %v336_v34  ;;  %v319_v41 = vmul.f32 0.6931472, %v1517_v35  ;;  %v309_v42 = vpop.xlane.xlu1 %308 }
 0x156   : > { %v312_v43 = vpop.xlane.xlu0 %311  ;;  %v1521_v44 = vpop.eup %1520  ;;  %v369_v20 = vmul.f32 %v1519_v37, %v1793_v52  ;;  %1536 = vlog2.f32 %v309_v42  ;;  %413 = vperm.xlu0 %1476, %v1834_v36  }
 0x157   : > { %v1523_v47 = vpop.eup %1522  ;;  %356 = vst.msk [vmem:[%s1832_s4] sm:$0xff] %vm225_vm0, %v346_v40  ;;  %v337_v49 = vadd.f32 %v319_v41, %v1753_v26  ;;  %v321_v50 = vmul.f32 0.6931472, %v1521_v44  ;;  %1538 = vrcp.f32 %v303_v29 }
 0x158   : > { %v1525_v51 = vpop.eup %1524  ;;  %v1842_v53 = vmul.f32 -1.0, %v369_v20  ;;  %v371_v0 = vmul.f32 %v1523_v47, %v1779_v45  ;;  %1540 = vlog2.f32 %v312_v43  ;;  %v1620_v20 = vmov 4  }
 0x159   : > { %v1527_v54 = vpop.eup %1526  ;;  %v347_v52 = vsub.f32 %v1709_v2, %v337_v49  ;;  %v338_v56 = vadd.f32 %v321_v50, %v1747_v21  ;;  %v323_v57 = vmul.f32 0.6931472, %v1525_v51  ;;  %1542 = vrcp.f32 %v306_v30  ;;  %v315_v60 = vpop.xlane.xlu1 %314 }
 0x15a   : > { %v1529_v61 = vpop.eup %1528  ;;  %418 = vperm.xlu1 %1477, %v1842_v53   ;;  %1544 = vlog2.f32 %v315_v60  ;;  %v1852_v4 = vmul.f32 -1.0, %v371_v0  ;;  %v373_v21 = vmul.f32 %v1527_v54, %v1795_v55  ;;  %v1621_v47 = vmov 5  }
 0x15b   : > { %357 = vst.msk [vmem:[%s1832_s4 + $0x8] sm:$0xff] %vm225_vm0, %v347_v52  ;;  %v348_v26 = vsub.f32 %v1707_v1, %v338_v56  ;;  %v339_v45 = vadd.f32 %v323_v57, %v1755_v27  ;;  %v325_v3 = vmul.f32 0.6931472, %v1529_v61  ;;  %1546 = vrcp.f32 %v315_v60  ;;  %v1978_v56 = vld [vmem:[%s1971_s7] sm:$0x1] }
 0x15c   : > { %v1531_v2 = vpop.eup %1530  ;;  %1548 = vrcp.f32 %v309_v42  ;;  %v1864_v22 = vmul.f32 -1.0, %v373_v21  ;;  %v1622_v49 = vmov 6   ;;  %v1623_v0 = vmov 7  }
 0x15d   : > { %v1533_v10 = vpop.eup %1532  ;;  %358 = vst.msk [vmem:[%s1832_s4 + $0x10] sm:$0xff] %vm225_vm0, %v348_v26  ;;  %v349_v11 = vsub.f32 %v1715_v5, %v339_v45  ;;  %v340_v14 = vadd.f32 %v325_v3, %v1761_v32  ;;  %v327_v15 = vmul.f32 0.6931472, %v1531_v2  ;;  %1550 = vrcp.f32 %v312_v43  ;;  %v1985_v26 = vld [vmem:[%s1971_s7 + $0x2] sm:$0x1] }
 0x15e   : > { %v1535_v18 = vpop.eup %1534  ;;  %423 = vperm.xlu1 %1477, %v1852_v4   ;;  %v375_v5 = vmul.f32 %v1533_v10, %v1801_v58  ;;  %v1617_v43 = vmov 1   ;;  %v466_v54 = vlaneseq  ;;  %vm501_vm1 = vcmp.eq.s32.totalorder %v1978_v56, 1 }
 0x15f   : > { %359 = vst.msk [vmem:[%s1832_s4 + $0x18] sm:$0xff] %vm225_vm0, %v349_v11  ;;  %v350_v1 = vsub.f32 %v1721_v8, %v340_v14  ;;  %v341_v27 = vadd.f32 %v327_v15, %v1763_v33  ;;  %v329_v55 = vmul.f32 0.6931472, %v1535_v18  ;;  %vm396_vm2 = vcmp.eq.s32.totalorder %v1978_v56, 0  ;;  %v2001_v14 = vld [vmem:[%s1971_s7 + $0x3] sm:$0x1] }
 0x160   : > { %v1537_v19 = vpop.eup %1536  ;;  %v1876_v31 = vmul.f32 -1.0, %v375_v5  ;;  %v467_v57 = vshrl.u32 %v466_v54, 7  ;;  %v1624_v45 = vmov 0.0   ;;  %vm398_vm3 = vcmp.eq.s32.totalorder %v1985_v26, 0 }
 0x161   : > { %v1539_v23 = vpop.eup %1538  ;;  %360 = vst.msk [vmem:[%s1832_s4 + $0x20] sm:$0xff] %vm225_vm0, %v350_v1  ;;  %v351_v32 = vsub.f32 %v1723_v9, %v341_v27  ;;  %v342_v24 = vadd.f32 %v329_v55, %v1769_v38  ;;  %v331_v25 = vmul.f32 0.6931472, %v1537_v19  ;;  %v1381_v3 = vsel %vm501_vm1, 1.0, %v1624_v45 }
 0x162   : > { %v1541_v28 = vpop.eup %1540  ;;  %428 = vperm.xlu1 %1477, %v1864_v22   ;;  %v377_v9 = vmul.f32 %v1539_v23, %v1803_v59  ;;  %v1990_v2 = vsub.s32 0, %v467_v57  ;;  %vm503_vm4 = vcmp.eq.s32.totalorder %v1985_v26, 1  ;;  %v1376_v11 = vsel %vm396_vm2, 1.0, %v1624_v45  ;;  %v2012_v23 = vld [vmem:[%s1971_s7 + $0x1] sm:$0x1] }
 0x163   : > { %v1543_v8 = vpop.eup %1542  ;;  %361 = vst.msk [vmem:[%s1832_s4 + $0x28] sm:$0xff] %vm225_vm0, %v351_v32  ;;  %v352_v33 = vsub.f32 %v1729_v12, %v342_v24  ;;  %v343_v58 = vadd.f32 %v331_v25, %v1771_v39  ;;  %v333_v29 = vmul.f32 0.6931472, %v1541_v28  ;;  %v1378_v18 = vsel %vm398_vm3, 1.0, %v1624_v45  ;;  %v2018_v24 = vld [vmem:[%s1971_s7 + $0x4] sm:$0x1] }
 0x164   : > { %v1545_v30 = vpop.eup %1544  ;;  %v1889_v59 = vmul.f32 -1.0, %v377_v9  ;;  %v379_v41 = vmul.f32 %v1543_v8, %v1809_v62  ;;  %v564_v15 = vrot.slane %v1381_v3, %v1990_v2  ;;  %v1383_v1 = vsel %vm503_vm4, 1.0, %v1624_v45 }
 0x165   : > { %v1547_v38 = vpop.eup %1546  ;;  %362 = vst.msk [vmem:[%s1832_s4 + $0x30] sm:$0xff] %vm225_vm0, %v352_v33  ;;  %v353_v34 = vsub.f32 %v1731_v13, %v343_v58  ;;  %v344_v35 = vadd.f32 %v333_v29, %v1781_v46  ;;  %v335_v37 = vmul.f32 0.6931472, %v1545_v30  ;;  %v469_v27 = vrot.slane %v1376_v11, %v1990_v2 }
 0x166   : > { %v385_v12 = vmul.f32 %v1547_v38, %v1819_v7  ;;  %433 = vperm.xlu1 %1477, %v1876_v31   ;;  %v1549_v13 = vpop.eup %1548  ;;  %vm399_vm5 = vcmp.eq.s32.totalorder %v2001_v14, 0  ;;  %vm504_vm6 = vcmp.eq.s32.totalorder %v2001_v14, 1  ;;  %v2015_v32 = vrot.slane %v1378_v18, %v1990_v2 }
 0x167   : > { %363 = vst.msk [vmem:[%s1832_s4 + $0x38] sm:$0xff] %vm225_vm0, %v353_v34  ;;  %v354_v39 = vsub.f32 %v1737_v16, %v344_v35  ;;  %v345_v40 = vadd.f32 %v335_v37, %v1785_v48  ;;  %v1901_v16 = vmul.f32 -1.0, %v379_v41  ;;  %v381_v48 = vmul.f32 %v1549_v13, %v1811_v63  ;;  %v1551_v7 = vpop.eup %1550 }
 0x168   : > { %v1892_v42 = vmul.f32 -1.0, %v385_v12  ;;  %v1618_v63 = vmov 2   ;;  %v2021_v28 = vrot.slane %v1383_v1, %v1990_v2  ;;  %v1379_v8 = vsel %vm399_vm5, 1.0, %v1624_v45 }
 0x169   : > { %364 = vst.msk [vmem:[%s1832_s4 + $0x40] sm:$0xff] %vm225_vm0, %v354_v39  ;;  %v355_v46 = vsub.f32 %v1739_v17, %v345_v40  ;;  %v1906_v62 = vmul.f32 -1.0, %v381_v48  ;;  %v383_v17 = vmul.f32 %v1551_v7, %v1817_v6  ;;  %v1619_v6 = vmov 3  }
 0x16a   : > { %458 = vperm.xlu0 %1476, %v1892_v42   ;;  %438 = vperm.xlu1 %1477, %v1889_v59   ;;  %v1384_v33 = vsel %vm504_vm6, 1.0, %v1624_v45  ;;  %vm505_vm7 = vcmp.eq.s32.totalorder %v2018_v24, 1  ;;  %vm397_vm8 = vcmp.eq.s32.totalorder %v2012_v23, 0  ;;  %vm400_vm9 = vcmp.eq.s32.totalorder %v2018_v24, 0 }
 0x16b   : > { %365 = vst.msk [vmem:[%s1832_s4 + $0x48] sm:$0xff] %vm225_vm0, %v355_v46  ;;  %v1911_v44 = vmul.f32 -1.0, %v383_v17  ;;  %v2035_v38 = vrot.slane %v1379_v8, %v1990_v2  ;;  %v2039_v34 = vrot.slane %v1384_v33, %v1990_v2  ;;  %v1385_v35 = vsel %vm505_vm7, 1.0, %v1624_v45 }
 0x16c   : > { %vm502_vm10 = vcmp.eq.s32.totalorder %v2012_v23, 1  ;;  %v1377_v39 = vsel %vm397_vm8, 1.0, %v1624_v45  ;;  %v1380_v40 = vsel %vm400_vm9, 1.0, %v1624_v45  ;;  %vm606_vm11 = vcmp.eq.s32.totalorder %v1978_v56, 2 }
 0x16d   : > { %v2052_v48 = vrot.slane %v1385_v35, %v1990_v2  ;;  %v1382_v7 = vsel %vm502_vm10, 1.0, %v1624_v45  ;;  %vm607_vm12 = vcmp.eq.s32.totalorder %v2012_v23, 2  ;;  %vm608_vm13 = vcmp.eq.s32.totalorder %v1985_v26, 2 }
 0x16e   : > { %1479 = vset.pattern.permute.xlu0 %v1617_v43  ;;  %443 = vperm.xlu1 %1477, %v1901_v16   ;;  %v1387_v18 = vsel %vm607_vm12, 1.0, %v1624_v45  ;;  %vm609_vm14 = vcmp.eq.s32.totalorder %v2001_v14, 2  ;;  %vm610_vm15 = vcmp.eq.s32.totalorder %v2018_v24, 2  ;;  %vm711_vm0 = vcmp.eq.s32.totalorder %v1978_v56, 3 }
 0x16f   : > { %521 = vperm.xlu0 %1479, %v1842_v53   ;;  %v1389_v35 = vsel %vm609_vm14, 1.0, %v1624_v45  ;;  %vm713_vm1 = vcmp.eq.s32.totalorder %v1985_v26, 3  ;;  %vm714_vm2 = vcmp.eq.s32.totalorder %v2001_v14, 3  ;;  %vm715_vm3 = vcmp.eq.s32.totalorder %v2018_v24, 3 }
 0x170   : > { %vm816_vm4 = vcmp.eq.s32.totalorder %v1978_v56, 4  ;;  %vm712_vm5 = vcmp.eq.s32.totalorder %v2012_v23, 3  ;;  %vm817_vm6 = vcmp.eq.s32.totalorder %v2012_v23, 4  ;;  %vm818_vm7 = vcmp.eq.s32.totalorder %v1985_v26, 4 }
 0x171   : > { %vm819_vm8 = vcmp.eq.s32.totalorder %v2001_v14, 4  ;;  %vm820_vm9 = vcmp.eq.s32.totalorder %v2018_v24, 4  ;;  %vm921_vm10 = vcmp.eq.s32.totalorder %v1978_v56, 5  ;;  %vm1131_vm12 = vcmp.eq.s32.totalorder %v1978_v56, 7 }
 0x172   : > { %448 = vperm.xlu1 %1477, %v1906_v62   ;;  %vm924_vm14 = vcmp.eq.s32.totalorder %v2001_v14, 5 }
 0x173   : > { %533 = vperm.xlu0 %1479, %v1876_v31  }
 0x176   : > { %453 = vperm.xlu1 %1477, %v1911_v44  }
 0x177   : > { %541 = vperm.xlu0 %1479, %v1901_v16  }
 0x17a   : > { %1478 = vset.pattern.permute.xlu1 %v1617_v43  ;;  %v485_v43 = vrot.slane %v1380_v40, %v1990_v2 }
 0x17b   : > { %549 = vperm.xlu0 %1479, %v1911_v44   ;;  %517 = vperm.xlu1 %1478, %v1834_v36  }
 0x17f   : > { %1480 = vset.pattern.permute.xlu0 %v1618_v63  ;;  %525 = vperm.xlu1 %1478, %v1852_v4  }
 0x180   : > { %622 = vperm.xlu0 %1480, %v1834_v36  }
 0x183   : > { %529 = vperm.xlu1 %1478, %v1864_v22  }
 0x184   : > { %634 = vperm.xlu0 %1480, %v1864_v22  }
 0x187   : > { %537 = vperm.xlu1 %1478, %v1889_v59  }
 0x188   : > { %642 = vperm.xlu0 %1480, %v1889_v59  }
 0x18b   : > { %545 = vperm.xlu1 %1478, %v1906_v62  }
 0x18c   : > { %650 = vperm.xlu0 %1480, %v1906_v62  }
 0x18f   : > { %553 = vperm.xlu1 %1478, %v1892_v42  }
 0x190   : > { %658 = vperm.xlu0 %1480, %v1892_v42  }
 0x193   : > { %1481 = vset.pattern.permute.xlu1 %v1618_v63  ;;  %v1386_v63 = vsel %vm606_vm11, 1.0, %v1624_v45  ;;  %vm1026_vm11 = vcmp.eq.s32.totalorder %v1978_v56, 6 }
 0x194   : > { %1483 = vset.pattern.permute.xlu0 %v1619_v6  ;;  %626 = vperm.xlu1 %1481, %v1842_v53  }
 0x195   : > { %731 = vperm.xlu0 %1483, %v1842_v53  }
 0x198   : > { %630 = vperm.xlu1 %1481, %v1852_v4  }
 0x199   : > { %743 = vperm.xlu0 %1483, %v1876_v31  }
 0x19c   : > { %638 = vperm.xlu1 %1481, %v1876_v31  }
 0x19d   : > { %751 = vperm.xlu0 %1483, %v1901_v16  }
 0x1a0   : > { %646 = vperm.xlu1 %1481, %v1901_v16  }
 0x1a1   : > { %759 = vperm.xlu0 %1483, %v1911_v44  }
 0x1a4   : > { %654 = vperm.xlu1 %1481, %v1911_v44  }
 0x1a5   : > { %1484 = vset.pattern.permute.xlu0 %v1620_v20 }
 0x1a6   : > { %832 = vperm.xlu0 %1484, %v1834_v36  }
 0x1a8   : > { %1482 = vset.pattern.permute.xlu1 %v1619_v6  ;;  %v473_v6 = vrot.slane %v1377_v39, %v1990_v2 }
 0x1a9   : > { %727 = vperm.xlu1 %1482, %v1834_v36  }
 0x1aa   : > { %844 = vperm.xlu0 %1484, %v1864_v22  }
 0x1ad   : > { %735 = vperm.xlu1 %1482, %v1852_v4  }
 0x1ae   : > { %852 = vperm.xlu0 %1484, %v1889_v59  }
 0x1b1   : > { %739 = vperm.xlu1 %1482, %v1864_v22  }
 0x1b2   : > { %860 = vperm.xlu0 %1484, %v1906_v62  }
 0x1b5   : > { %747 = vperm.xlu1 %1482, %v1889_v59  }
 0x1b6   : > { %868 = vperm.xlu0 %1484, %v1892_v42  }
 0x1b9   : > { %755 = vperm.xlu1 %1482, %v1906_v62  }
 0x1ba   : > { %1487 = vset.pattern.permute.xlu0 %v1621_v47 }
 0x1bb   : > { %941 = vperm.xlu0 %1487, %v1842_v53  }
 0x1bd   : > { %763 = vperm.xlu1 %1482, %v1892_v42  }
 0x1bf   : > { %953 = vperm.xlu0 %1487, %v1876_v31  }
 0x1c1   : > { %1485 = vset.pattern.permute.xlu1 %v1620_v20 }
 0x1c2   : > { %836 = vperm.xlu1 %1485, %v1842_v53  }
 0x1c3   : > { %961 = vperm.xlu0 %1487, %v1901_v16  }
 0x1c6   : > { %840 = vperm.xlu1 %1485, %v1852_v4  }
 0x1c7   : > { %969 = vperm.xlu0 %1487, %v1911_v44  }
 0x1ca   : > { %848 = vperm.xlu1 %1485, %v1876_v31  }
 0x1cb   : > { %1488 = vset.pattern.permute.xlu0 %v1622_v49 }
 0x1cc   : > { %1042 = vperm.xlu0 %1488, %v1834_v36  }
 0x1ce   : > { %856 = vperm.xlu1 %1485, %v1901_v16  }
 0x1d0   : > { %1054 = vperm.xlu0 %1488, %v1864_v22  }
 0x1d2   : > { %864 = vperm.xlu1 %1485, %v1911_v44  }
 0x1d4   : > { %1062 = vperm.xlu0 %1488, %v1889_v59  }
 0x1d5   : > { %v1980_v60 = vpop.permute.xlu0 %413 }
 0x1d6   : > { %1486 = vset.pattern.permute.xlu1 %v1621_v47 }
 0x1d7   : > { %937 = vperm.xlu1 %1486, %v1834_v36  }
 0x1d8   : > { %1070 = vperm.xlu0 %1488, %v1906_v62  }
 0x1d9   : > { %v419_v50 = vpop.permute.xlu1 %418 }
 0x1da   : > { %v492_v5 = vmul.f32 %v469_v27, %v419_v50  ;;  %v491_v50 = vmul.f32 %v469_v27, %v1980_v60 }
 0x1db   : > { %945 = vperm.xlu1 %1486, %v1852_v4  }
 0x1dc   : > { %1078 = vperm.xlu0 %1488, %v1892_v42  }
 0x1dd   : > { %v1963_v51 = vpop.permute.xlu1 %423 }
 0x1df   : > { %949 = vperm.xlu1 %1486, %v1864_v22  }
 0x1e0   : > { %1491 = vset.pattern.permute.xlu0 %v1623_v0 }
 0x1e1   : > { %v1973_v52 = vpop.permute.xlu1 %428  ;;  %1151 = vperm.xlu0 %1491, %v1842_v53  }
 0x1e2   : > { %v494_v33 = vmul.f32 %v473_v6, %v1973_v52 }
 0x1e3   : > { %957 = vperm.xlu1 %1486, %v1889_v59  }
 0x1e5   : > { %v434_v61 = vpop.permute.xlu1 %433  ;;  %1163 = vperm.xlu0 %1491, %v1876_v31  }
 0x1e6   : > { %v495_v9 = vmul.f32 %v2015_v32, %v434_v61  ;;  %v669_v61 = vrot.slane %v1386_v63, %v1990_v2 }
 0x1e7   : > { %965 = vperm.xlu1 %1486, %v1906_v62  }
 0x1e9   : > { %v1993_v21 = vpop.permute.xlu1 %438  ;;  %1171 = vperm.xlu0 %1491, %v1901_v16   ;;  %v1996_v10 = vpop.permute.xlu0 %458 }
 0x1ea   : > { %v496_v39 = vmul.f32 %v2015_v32, %v1993_v21 }
 0x1eb   : > { %973 = vperm.xlu1 %1486, %v1892_v42  }
 0x1ed   : > { %v444_v55 = vpop.permute.xlu1 %443  ;;  %1179 = vperm.xlu0 %1491, %v1911_v44  }
 0x1ee   : > { %v522_v19 = vpop.permute.xlu0 %521  ;;  %v497_v13 = vmul.f32 %v2035_v38, %v444_v55  ;;  %v493_v55 = vmul.f32 %v473_v6, %v1963_v51 }
 0x1ef   : > { %v587_v25 = vmul.f32 %v564_v15, %v522_v19  ;;  %1489 = vset.pattern.permute.xlu1 %v1622_v49  ;;  %v568_v49 = vrot.slane %v1382_v7, %v1990_v2 }
 0x1f0   : > { %1046 = vperm.xlu1 %1489, %v1842_v53  }
 0x1f1   : > { %v2026_v58 = vadd.f32 %v587_v25, %v492_v5  ;;  %v2028_v29 = vpop.permute.xlu1 %448  ;;  %v1388_v5 = vsel %vm608_vm13, 1.0, %v1624_v45  ;;  %vm923_vm13 = vcmp.eq.s32.totalorder %v1985_v26, 5 }
 0x1f2   : > { %v534_v30 = vpop.permute.xlu0 %533  ;;  %v498_v63 = vmul.f32 %v2035_v38, %v2028_v29 }
 0x1f3   : > { %v590_v53 = vmul.f32 %v2021_v28, %v534_v30 }
 0x1f4   : > { %1050 = vperm.xlu1 %1489, %v1852_v4  }
 0x1f5   : > { %v2044_v37 = vadd.f32 %v590_v53, %v495_v9  ;;  %v454_v12 = vpop.permute.xlu1 %453  ;;  %v677_v53 = vrot.slane %v1388_v5, %v1990_v2 }
 0x1f6   : > { %v542_v41 = vpop.permute.xlu0 %541  ;;  %v499_v54 = vmul.f32 %v485_v43, %v454_v12 }
 0x1f7   : > { %v592_v46 = vmul.f32 %v2039_v34, %v542_v41 }
 0x1f8   : > { %1058 = vperm.xlu1 %1489, %v1876_v31  }
 0x1f9   : > { %v2057_v17 = vadd.f32 %v592_v46, %v497_v13 }
 0x1fa   : > { %v518_v20 = vpop.permute.xlu1 %517  ;;  %v550_v47 = vpop.permute.xlu0 %549 }
 0x1fb   : > { %v586_v57 = vmul.f32 %v564_v15, %v518_v20  ;;  %v594_v31 = vmul.f32 %v2052_v48, %v550_v47  ;;  %v673_v15 = vrot.slane %v1387_v18, %v1990_v2 }
 0x1fc   : > { %1066 = vperm.xlu1 %1489, %v1901_v16  }
 0x1fd   : > { %v596_v3 = vadd.f32 %v586_v57, %v491_v50  ;;  %v2067_v11 = vadd.f32 %v594_v31, %v499_v54  ;;  %v500_v50 = vmul.f32 %v485_v43, %v1996_v10  ;;  %v1393_v43 = vsel %vm713_vm1, 1.0, %v1624_v45 }
 0x1fe   : > { %v526_v1 = vpop.permute.xlu1 %525  ;;  %vm925_vm1 = vcmp.eq.s32.totalorder %v2018_v24, 5 }
 0x1ff   : > { %v588_v19 = vmul.f32 %v568_v49, %v526_v1  ;;  %v623_v60 = vpop.permute.xlu0 %622 }
 0x200   : > { %v691_v27 = vmul.f32 %v669_v61, %v623_v60  ;;  %1074 = vperm.xlu1 %1489, %v1911_v44  }
 0x201   : > { %v598_v16 = vadd.f32 %v588_v19, %v493_v55 }
 0x202   : > { %v2075_v25 = vadd.f32 %v691_v27, %v596_v3  ;;  %v530_v8 = vpop.permute.xlu1 %529  ;;  %v782_v27 = vrot.slane %v1393_v43, %v1990_v2 }
 0x203   : > { %v589_v30 = vmul.f32 %v568_v49, %v530_v8  ;;  %v635_v9 = vpop.permute.xlu0 %634  ;;  %v1391_v49 = vsel %vm711_vm0, 1.0, %v1624_v45  ;;  %v1394_v8 = vsel %vm714_vm2, 1.0, %v1624_v45  ;;  %vm1133_vm0 = vcmp.eq.s32.totalorder %v1985_v26, 7 }
 0x204   : > { %v694_v51 = vmul.f32 %v673_v15, %v635_v9  ;;  %1490 = vset.pattern.permute.xlu1 %v1623_v0  ;;  %v681_v0 = vrot.slane %v1389_v35, %v1990_v2  ;;  %v774_v31 = vrot.slane %v1391_v49, %v1990_v2  ;;  %vm1029_vm2 = vcmp.eq.s32.totalorder %v2001_v14, 6 }
 0x205   : > { %v599_v44 = vadd.f32 %v589_v30, %v494_v33  ;;  %1147 = vperm.xlu1 %1490, %v1834_v36   ;;  %v1390_v36 = vsel %vm610_vm15, 1.0, %v1624_v45  ;;  %vm1028_vm15 = vcmp.eq.s32.totalorder %v1985_v26, 6 }
 0x206   : > { %v538_v12 = vpop.permute.xlu1 %537  ;;  %v685_v20 = vrot.slane %v1390_v36, %v1990_v2  ;;  %v1392_v36 = vsel %vm712_vm5, 1.0, %v1624_v45  ;;  %vm922_vm5 = vcmp.eq.s32.totalorder %v2012_v23, 5 }
 0x207   : > { %v2086_v40 = vadd.f32 %v694_v51, %v599_v44  ;;  %v591_v52 = vmul.f32 %v2021_v28, %v538_v12  ;;  %v643_v41 = vpop.permute.xlu0 %642  ;;  %v1395_v51 = vsel %vm715_vm3, 1.0, %v1624_v45  ;;  %vm1134_vm3 = vcmp.eq.s32.totalorder %v2001_v14, 7 }
 0x208   : > { %v696_v13 = vmul.f32 %v677_v53, %v643_v41  ;;  %v790_v12 = vrot.slane %v1395_v51, %v1990_v2 }
 0x209   : > { %v601_v46 = vadd.f32 %v591_v52, %v496_v39  ;;  %1155 = vperm.xlu1 %1490, %v1852_v4   ;;  %v1396_v52 = vsel %vm816_vm4, 1.0, %v1624_v45  ;;  %vm1030_vm4 = vcmp.eq.s32.totalorder %v2018_v24, 6 }
 0x20a   : > { %v546_v7 = vpop.permute.xlu1 %545 }
 0x20b   : > { %v2094_v6 = vadd.f32 %v696_v13, %v601_v46  ;;  %v593_v21 = vmul.f32 %v2039_v34, %v546_v7  ;;  %v651_v32 = vpop.permute.xlu0 %650  ;;  %v2135_v7 = vrot.slane %v1396_v52, %v1990_v2 }
 0x20c   : > { %v698_v28 = vmul.f32 %v681_v0, %v651_v32 }
 0x20d   : > { %v603_v47 = vadd.f32 %v593_v21, %v498_v63  ;;  %1159 = vperm.xlu1 %1490, %v1864_v22  }
 0x20e   : > { %v554_v4 = vpop.permute.xlu1 %553 }
 0x20f   : > { %v2102_v54 = vadd.f32 %v698_v28, %v603_v47  ;;  %v595_v29 = vmul.f32 %v2052_v48, %v554_v4  ;;  %v659_v38 = vpop.permute.xlu0 %658  ;;  %v778_v28 = vrot.slane %v1392_v36, %v1990_v2 }
 0x210   : > { %v700_v34 = vmul.f32 %v685_v20, %v659_v38 }
 0x211   : > { %v605_v57 = vadd.f32 %v595_v29, %v500_v50  ;;  %1167 = vperm.xlu1 %1490, %v1889_v59  }
 0x213   : > { %v2107_v3 = vadd.f32 %v700_v34, %v605_v57  ;;  %v627_v18 = vpop.permute.xlu1 %626  ;;  %v1398_v57 = vsel %vm818_vm7, 1.0, %v1624_v45  ;;  %vm1027_vm7 = vcmp.eq.s32.totalorder %v2012_v23, 6 }
 0x214   : > { %v692_v22 = vmul.f32 %v669_v61, %v627_v18  ;;  %v732_v1 = vpop.permute.xlu0 %731 }
 0x215   : > { %v797_v55 = vmul.f32 %v774_v31, %v732_v1  ;;  %1175 = vperm.xlu1 %1490, %v1906_v62   ;;  %v2156_v1 = vrot.slane %v1398_v57, %v1990_v2 }
 0x216   : > { %v702_v10 = vadd.f32 %v692_v22, %v2026_v58 }
 0x217   : > { %v631_v48 = vpop.permute.xlu1 %630 }
 0x218   : > { %v2113_v19 = vadd.f32 %v797_v55, %v702_v10  ;;  %v693_v59 = vmul.f32 %v673_v15, %v631_v48  ;;  %v744_v60 = vpop.permute.xlu0 %743  ;;  %v786_v15 = vrot.slane %v1394_v8, %v1990_v2  ;;  %v1399_v10 = vsel %vm819_vm8, 1.0, %v1624_v45 }
 0x219   : > { %1183 = vperm.xlu1 %1490, %v1892_v42   ;;  %v800_v58 = vmul.f32 %v782_v27, %v744_v60  ;;  %vm1132_vm8 = vcmp.eq.s32.totalorder %v2012_v23, 7 }
 0x21a   : > { %v703_v61 = vadd.f32 %v693_v59, %v598_v16 }
 0x21b   : > { %v639_v5 = vpop.permute.xlu1 %638 }
 0x21c   : > { %v695_v62 = vmul.f32 %v677_v53, %v639_v5  ;;  %v752_v33 = vpop.permute.xlu0 %751  ;;  %v2165_v5 = vrot.slane %v1399_v10, %v1990_v2 }
 0x21d   : > { %v802_v35 = vmul.f32 %v786_v15, %v752_v33 }
 0x21e   : > { %v705_v30 = vadd.f32 %v695_v62, %v2044_v37  ;;  %v1400_v62 = vsel %vm820_vm9, 1.0, %v1624_v45 }
 0x21f   : > { %v647_v9 = vpop.permute.xlu1 %646 }
 0x220   : > { %v697_v44 = vmul.f32 %v681_v0, %v647_v9  ;;  %v760_v42 = vpop.permute.xlu0 %759  ;;  %v2123_v16 = vadd.f32 %v800_v58, %v705_v30  ;;  %v2173_v9 = vrot.slane %v1400_v62, %v1990_v2  ;;  %v1404_v62 = vsel %vm924_vm14, 1.0, %v1624_v45 }
 0x221   : > { %v804_v0 = vmul.f32 %v790_v12, %v760_v42 }
 0x222   : > { %v707_v53 = vadd.f32 %v697_v44, %v2057_v17 }
 0x223   : > { %v655_v39 = vpop.permute.xlu1 %654 }
 0x224   : > { %v699_v37 = vmul.f32 %v685_v20, %v655_v39  ;;  %v2130_v41 = vadd.f32 %v802_v35, %v707_v53 }
 0x225   : > { %v833_v13 = vpop.permute.xlu0 %832 }
 0x226   : > { %v709_v46 = vadd.f32 %v699_v37, %v2067_v11  ;;  %v901_v20 = vmul.f32 %v2135_v7, %v833_v13  ;;  %v1397_v11 = vsel %vm817_vm6, 1.0, %v1624_v45  ;;  %vm1135_vm6 = vcmp.eq.s32.totalorder %v2018_v24, 7 }
 0x227   : > { %v2148_v38 = vrot.slane %v1397_v11, %v1990_v2 }
 0x228   : > { %v728_v17 = vpop.permute.xlu1 %727  ;;  %v2137_v63 = vadd.f32 %v804_v0, %v709_v46 }
 0x229   : > { %v796_v21 = vmul.f32 %v774_v31, %v728_v17  ;;  %v845_v32 = vpop.permute.xlu0 %844 }
 0x22a   : > { %v904_v22 = vmul.f32 %v2148_v38, %v845_v32 }
 0x22b   : > { %v806_v47 = vadd.f32 %v796_v21, %v2075_v25 }
 0x22c   : > { %v736_v4 = vpop.permute.xlu1 %735 }
 0x22d   : > { %v798_v49 = vmul.f32 %v778_v28, %v736_v4  ;;  %v853_v50 = vpop.permute.xlu0 %852  ;;  %v2145_v29 = vadd.f32 %v901_v20, %v806_v47  ;;  %v1401_v4 = vsel %vm921_vm10, 1.0, %v1624_v45 }
 0x22e   : > { %v2218_v57 = vrot.slane %v1401_v4, %v1990_v2 }
 0x22f   : > { %v2150_v34 = vadd.f32 %v798_v49, %v703_v61  ;;  %v906_v61 = vmul.f32 %v2156_v1, %v853_v50 }
 0x230   : > { %v740_v31 = vpop.permute.xlu1 %739 }
 0x231   : > { %v799_v18 = vmul.f32 %v778_v28, %v740_v31  ;;  %v861_v25 = vpop.permute.xlu0 %860 }
 0x233   : > { %v809_v55 = vadd.f32 %v799_v18, %v2086_v40  ;;  %v1406_v18 = vsel %vm1026_vm11, 1.0, %v1624_v45 }
 0x234   : > { %v748_v48 = vpop.permute.xlu1 %747  ;;  %v2231_v10 = vrot.slane %v1406_v18, %v1990_v2 }
 0x235   : > { %v801_v43 = vmul.f32 %v782_v27, %v748_v48  ;;  %v869_v59 = vpop.permute.xlu0 %868  ;;  %v2161_v60 = vadd.f32 %v904_v22, %v809_v55  ;;  %v908_v27 = vmul.f32 %v2165_v5, %v861_v25  ;;  %v1411_v25 = vsel %vm1131_vm12, 1.0, %v1624_v45 }
 0x236   : > { %v2234_v48 = vrot.slane %v1411_v25, %v1990_v2 }
 0x237   : > { %v811_v8 = vadd.f32 %v801_v43, %v2094_v6  ;;  %v910_v6 = vmul.f32 %v2173_v9, %v869_v59 }
 0x238   : > { %v756_v33 = vpop.permute.xlu1 %755 }
 0x239   : > { %v803_v40 = vmul.f32 %v786_v15, %v756_v33  ;;  %v2169_v58 = vadd.f32 %v906_v61, %v811_v8  ;;  %v1408_v33 = vsel %vm1028_vm15, 1.0, %v1624_v45 }
 0x23a   : > { %v942_v30 = vpop.permute.xlu0 %941 }
 0x23b   : > { %v813_v51 = vadd.f32 %v803_v40, %v2102_v54  ;;  %v1007_v56 = vmul.f32 %v2218_v57, %v942_v30 }
 0x23c   : > { %v764_v44 = vpop.permute.xlu1 %763 }
 0x23d   : > { %v805_v42 = vmul.f32 %v790_v12, %v764_v44  ;;  %v2176_v35 = vadd.f32 %v908_v27, %v813_v51 }
 0x23e   : > { %v2178_v53 = vpop.permute.xlu0 %953 }
 0x23f   : > { %v815_v15 = vadd.f32 %v805_v42, %v2107_v3 }
 0x241   : > { %v837_v39 = vpop.permute.xlu1 %836  ;;  %v2182_v37 = vadd.f32 %v910_v6, %v815_v15  ;;  %v2257_v6 = vrot.slane %v1404_v62, %v1990_v2  ;;  %v1405_v15 = vsel %vm925_vm1, 1.0, %v1624_v45 }
 0x242   : > { %v2184_v52 = vpop.permute.xlu0 %961  ;;  %v902_v50 = vmul.f32 %v2135_v7, %v837_v39  ;;  %v1403_v7 = vsel %vm923_vm13, 1.0, %v1624_v45  ;;  %v2261_v39 = vrot.slane %v1408_v33, %v1990_v2  ;;  %v2281_v25 = vrot.slane %v1405_v15, %v1990_v2 }
 0x243   : > { %v2243_v8 = vrot.slane %v1403_v7, %v1990_v2  ;;  %v1410_v7 = vsel %vm1030_vm4, 1.0, %v1624_v45 }
 0x244   : > { %v912_v22 = vadd.f32 %v902_v50, %v2113_v19 }
 0x245   : > { %v2186_v13 = vpop.permute.xlu1 %840  ;;  %v1010_v14 = vmul.f32 %v2243_v8, %v2178_v53 }
 0x246   : > { %v2188_v0 = vpop.permute.xlu0 %969  ;;  %v1017_v59 = vadd.f32 %v1007_v56, %v912_v22 }
 0x249   : > { %v849_v54 = vpop.permute.xlu1 %848 }
 0x24a   : > { %v905_v19 = vmul.f32 %v2156_v1, %v849_v54  ;;  %v1413_v1 = vsel %vm1133_vm0, 1.0, %v1624_v45  ;;  %v1409_v54 = vsel %vm1029_vm2, 1.0, %v1624_v45 }
 0x24b   : > { %v2190_v12 = vpop.permute.xlu0 %1042  ;;  %v2284_v22 = vrot.slane %v1409_v54, %v1990_v2 }
 0x24c   : > { %v915_v51 = vadd.f32 %v905_v19, %v2123_v16  ;;  %v2268_v16 = vrot.slane %v1413_v1, %v1990_v2  ;;  %v1014_v1 = vmul.f32 %v2281_v25, %v2188_v0 }
 0x24d   : > { %v857_v46 = vpop.permute.xlu1 %856 }
 0x24e   : > { %v907_v44 = vmul.f32 %v2165_v5, %v857_v46  ;;  %v1414_v5 = vsel %vm1134_vm3, 1.0, %v1624_v45  ;;  %v1020_v50 = vadd.f32 %v1010_v14, %v915_v51  ;;  %v1407_v51 = vsel %vm1027_vm7, 1.0, %v1624_v45 }
 0x24f   : > { %v2194_v17 = vpop.permute.xlu0 %1054 }
 0x250   : > { %v917_v4 = vadd.f32 %v907_v44, %v2130_v41  ;;  %v1012_v41 = vmul.f32 %v2257_v6, %v2184_v52 }
 0x251   : > { %v2192_v36 = vpop.permute.xlu1 %864 }
 0x252   : > { %v909_v53 = vmul.f32 %v2173_v9, %v2192_v36  ;;  %v1415_v36 = vsel %vm1135_vm6, 1.0, %v1624_v45  ;;  %v1022_v62 = vadd.f32 %v1012_v41, %v917_v4  ;;  %v1111_v4 = vmul.f32 %v2231_v10, %v2190_v12 }
 0x253   : > { %v2200_v32 = vpop.permute.xlu0 %1062 }
 0x256   : > { %v2196_v21 = vpop.permute.xlu1 %937 }
 0x257   : > { %v2204_v20 = vpop.permute.xlu0 %1070  ;;  %v1006_v52 = vmul.f32 %v2218_v57, %v2196_v21 }
 0x259   : > { %v1016_v14 = vadd.f32 %v1006_v52, %v2145_v29 }
 0x25a   : > { %v2198_v3 = vpop.permute.xlu1 %945 }
 0x25b   : > { %v2212_v49 = vpop.permute.xlu0 %1078 }
 0x25e   : > { %v2202_v28 = vpop.permute.xlu1 %949 }
 0x260   : > { %v1152_v55 = vpop.permute.xlu0 %1151 }
 0x261   : > { %v1217_v40 = vmul.f32 %v2234_v48, %v1152_v55  ;;  %v2288_v55 = vrot.slane %v1414_v5, %v1990_v2  ;;  %v1412_v5 = vsel %vm1132_vm8, 1.0, %v1624_v45 }
 0x262   : > { %v2206_v47 = vpop.permute.xlu1 %957  ;;  %v1198_v29 = vrot.slane %v1412_v5, %v1990_v2 }
 0x264   : > { %v1164_v26 = vpop.permute.xlu0 %1163 }
 0x265   : > { %v1220_v9 = vmul.f32 %v2268_v16, %v1164_v26 }
 0x266   : > { %v2209_v11 = vpop.permute.xlu1 %965 }
 0x268   : > { %v1172_v24 = vpop.permute.xlu0 %1171 }
 0x269   : > { %v1222_v26 = vmul.f32 %v2288_v55, %v1172_v24  ;;  %v1121_v24 = vadd.f32 %v1111_v4, %v1016_v14 }
 0x26a   : > { %v2221_v31 = vpop.permute.xlu1 %973 }
 0x26c   : > { %v1180_v57 = vpop.permute.xlu0 %1179 }
 0x26f   : > { %v1047_v43 = vpop.permute.xlu1 %1046 }
 0x270   : > { %v1112_v61 = vmul.f32 %v2231_v10, %v1047_v43  ;;  %v1402_v43 = vsel %vm922_vm5, 1.0, %v1624_v45 }
 0x271   : > { %v988_v21 = vrot.slane %v1402_v43, %v1990_v2 }
 0x272   : > { %v1122_v30 = vadd.f32 %v1112_v61, %v1017_v59  ;;  %v919_v59 = vadd.f32 %v909_v53, %v2137_v63  ;;  %v1093_v53 = vrot.slane %v1407_v51, %v1990_v2 }
 0x273   : > { %v2252_v27 = vpop.permute.xlu1 %1050  ;;  %v1009_v45 = vmul.f32 %v988_v21, %v2202_v28 }
 0x274   : > { %v1227_v42 = vadd.f32 %v1217_v40, %v1122_v30  ;;  %v2303_v40 = vrot.slane %v1410_v7, %v1990_v2  ;;  %v2306_v30 = vrot.slane %v1415_v36, %v1990_v2  ;;  %v1024_v54 = vadd.f32 %v1014_v1, %v919_v59 }
 0x275   : > { %v1113_v7 = vmul.f32 %v1093_v53, %v2252_v27  ;;  %v1114_v28 = vmul.f32 %v1093_v53, %v2194_v17 }
 0x276   : > { %1237 = vst [vmem:[%s2271_s10 + $0x8] sm:$0xff] %v1227_v42  ;;  %v903_v42 = vmul.f32 %v2148_v38, %v2186_v13  ;;  %v1224_v23 = vmul.f32 %v2306_v30, %v1180_v57  ;;  %v1008_v38 = vmul.f32 %v988_v21, %v2198_v3  ;;  %v1019_v3 = vadd.f32 %v1009_v45, %v2161_v60 }
 0x277   : > { %v1059_v46 = vpop.permute.xlu1 %1058 }
 0x278   : > { %v1115_v18 = vmul.f32 %v2261_v39, %v1059_v46  ;;  %v913_v13 = vadd.f32 %v903_v42, %v2150_v34  ;;  %v1011_v34 = vmul.f32 %v2243_v8, %v2206_v47  ;;  %v1116_v47 = vmul.f32 %v2261_v39, %v2200_v32 }
 0x27a   : > { %v1125_v56 = vadd.f32 %v1115_v18, %v1020_v50  ;;  %v1018_v12 = vadd.f32 %v1008_v38, %v913_v13  ;;  %v1021_v43 = vadd.f32 %v1011_v34, %v2169_v58 }
 0x27b   : > { %v1067_v19 = vpop.permute.xlu1 %1066 }
 0x27c   : > { %v1230_v61 = vadd.f32 %v1220_v9, %v1125_v56  ;;  %v1117_v33 = vmul.f32 %v2284_v22, %v1067_v19  ;;  %v1123_v36 = vadd.f32 %v1113_v7, %v1018_v12  ;;  %v1124_v19 = vadd.f32 %v1114_v28, %v1019_v3 }
 0x27d   : > { %v1126_v58 = vadd.f32 %v1116_v47, %v1021_v43 }
 0x27e   : > { %1240 = vst [vmem:[%s2271_s10 + $0x20] sm:$0xff] %v1230_v61  ;;  %v1127_v63 = vadd.f32 %v1117_v33, %v1022_v62  ;;  %v1015_v61 = vmul.f32 %v2281_v25, %v2221_v31  ;;  %v1120_v31 = vmul.f32 %v2303_v40, %v2212_v49 }
 0x27f   : > { %v1075_v44 = vpop.permute.xlu1 %1074 }
 0x280   : > { %v1232_v15 = vadd.f32 %v1222_v26, %v1127_v63  ;;  %v1119_v0 = vmul.f32 %v2303_v40, %v1075_v44  ;;  %v1025_v32 = vadd.f32 %v1015_v61, %v2182_v37 }
 0x282   : > { %1242 = vst [vmem:[%s2271_s10 + $0x30] sm:$0xff] %v1232_v15  ;;  %v1129_v46 = vadd.f32 %v1119_v0, %v1024_v54 }
 0x284   : > { %v1234_v50 = vadd.f32 %v1224_v23, %v1129_v46  ;;  %v1148_v18 = vpop.permute.xlu1 %1147 }
 0x285   : > { %v1216_v41 = vmul.f32 %v2234_v48, %v1148_v18  ;;  %v1013_v48 = vmul.f32 %v2257_v6, %v2209_v11  ;;  %v1118_v6 = vmul.f32 %v2284_v22, %v2204_v20  ;;  %v1130_v20 = vadd.f32 %v1120_v31, %v1025_v32 }
 0x286   : > { %1244 = vst [vmem:[%s2271_s10 + $0x40] sm:$0xff] %v1234_v50 }
 0x287   : > { %v1226_v10 = vadd.f32 %v1216_v41, %v1121_v24  ;;  %v1023_v17 = vadd.f32 %v1013_v48, %v2176_v35 }
 0x288   : > { %v1156_v9 = vpop.permute.xlu1 %1155 }
 0x289   : > { %1236 = vst [vmem:[%s2271_s10] sm:$0xff] %v1226_v10  ;;  %v1218_v2 = vmul.f32 %v1198_v29, %v1156_v9  ;;  %v1128_v39 = vadd.f32 %v1118_v6, %v1023_v17 }
 0x28b   : > { %v1228_v27 = vadd.f32 %v1218_v2, %v1123_v36 }
 0x28c   : > { %v1160_v56 = vpop.permute.xlu1 %1159 }
 0x28d   : > { %1238 = vst [vmem:[%s2271_s10 + $0x10] sm:$0xff] %v1228_v27  ;;  %v1219_v60 = vmul.f32 %v1198_v29, %v1160_v56 }
 0x28f   : > { %v1229_v8 = vadd.f32 %v1219_v60, %v1124_v19 }
 0x290   : > { %v1168_v59 = vpop.permute.xlu1 %1167 }
 0x291   : > { %1239 = vst [vmem:[%s2271_s10 + $0x18] sm:$0xff] %v1229_v8  ;;  %v1221_v11 = vmul.f32 %v2268_v16, %v1168_v59 }
 0x293   : > { %v1231_v62 = vadd.f32 %v1221_v11, %v1126_v58 }
 0x294   : > { %v1176_v33 = vpop.permute.xlu1 %1175 }
 0x295   : > { %1241 = vst [vmem:[%s2271_s10 + $0x28] sm:$0xff] %v1231_v62  ;;  %v1223_v35 = vmul.f32 %v2288_v55, %v1176_v33 }
 0x297   : > { %v1233_v25 = vadd.f32 %v1223_v35, %v1128_v39 }
 0x298   : > { %v1184_v16 = vpop.permute.xlu1 %1183 }
 0x299   : > { %1243 = vst [vmem:[%s2271_s10 + $0x38] sm:$0xff] %v1233_v25  ;;  %v1225_v22 = vmul.f32 %v2306_v30, %v1184_v16 }
 0x29b   : > { %v1235_v37 = vadd.f32 %v1225_v22, %v1130_v20 }
 0x29d   : > { %1245 = vst [vmem:[%s2271_s10 + $0x48] sm:$0xff] %v1235_v37 }
 0x29e   : > { %1565 = shalt.err (!%p1562_p3)
}
 0x29f   : > { %s1566_s29 = scalar_lea.hbm %s2364_s24, 1280  ;;  %s1570_s5 = scalar_lea.hbm %s2412_s2, 2560 }
 0x2a0   : > { %p1567_p4 = scmp.ne.s32.totalorder %s2364_s24, %s1566_s29  ;;  %p1571_p9 = scmp.lt.u32.totalorder %s2364_s24, %s2412_s2 }
 0x2a1   : > { %p1572_p10 = scmp.lt.u32.totalorder %s1570_s5, %s1566_s29  ;;  %p1574_p12 = scmp.lt.u32.totalorder %s1566_s29, %s2364_s24 }
 0x2a2   : > { %p1568_p7 = pnand %p1567_p4, %p1686_p5 }
 0x2a3   : > { %p1573_p11 = por %p1572_p10, %p1571_p9 }
 0x2a4   : > { %p1569_p8 = pneg %p1568_p7 }
 0x2a5   : > { %p1575_p13 = por %p1574_p12, %p1573_p11 }
 0x2a7   : > { %p1576_p0 = pnand %p1575_p13, %p1569_p8 }
 0x2a9   : > { %1579 = shalt.err (!%p1576_p0)
}
 0x2aa   : > { %s1626_s8 = smov 128   ;;  %s1627_s9 = smov 8  }
 0x2ab   : > { %1426 = dma.vmem_to_hbm [thread:$0]  (%p1686_p5), %s2359_s17, 1280, %s2364_s24, %s2369_s16, %s1626_s8, %s1626_s8, %s1627_s9  }
 0x2ac PF: > { %p1432_p1 = scmp.ge.s32.totalorder %s1614_s15, 2  ;;  %s1286_s10 = sand.u32 1, %s1602_s12  }
 0x2ad   : > { %s1287_s11 = scalar_lea.sflag [#allocation3], %s1286_s10 }
 0x2ae   : > { %p1429_p2 = pnand %p1432_p1, %p1690_p6 }
 0x2b0   : > { %1597 = dma.done.wait (!%p1429_p2), %s1287_s11, 1280  }
 0x2b1   : > { %1599 = vsyncadd (!%p1429_p2), %s1287_s11, 4294966016  ;;  %p14_p3 = scmp.ge.s32.totalorder %s1673_s18, 4   ;;  %s2416_s12 = smov %s1606_s13 }
 0x2b2   : > { %s2417_s13 = smov %s1610_s14  ;;  %s2418_s14 = smov %s1684_s21 }
 0x2b3   : > { %s2419_s15 = smov %s1673_s18  ;;  %16 = sbr.rel (!%p14_p3) target bundleno = 3 (0x3), region = 78 }
 0x2ba   :  { %1301 = vsyncpa [#allocation3], 1 }
 0x2bb   :  { %1303 = vsyncpa [#allocation3 + $0x1], 1 }

</bundles_post_ra>
